<compile_context>
chip_gen: v7x
topology: tpu7x:2x2x1
jax: 0.10.0
libtpu: 0.0.40
codegen_flags: <defaults>
</compile_context>

<pallas_src>
import numpy as np
import jax
import jax.numpy as jnp
from jax.experimental import pallas as pl
from jax.experimental.pallas import tpu as pltpu


# ----------------------------------------------------------------------------
# Host-side (numpy) construction of the per-qlayer 16x16 circuit unitaries.
# PennyLane default.qubit convention: wire 0 is the most-significant bit of the
# statevector index.
# ----------------------------------------------------------------------------
def _ry(t):
    c, s = np.cos(t / 2.0), np.sin(t / 2.0)
    return np.array([[c, -s], [s, c]], dtype=np.complex128)


def _rx(t):
    c, s = np.cos(t / 2.0), np.sin(t / 2.0)
    return np.array([[c, -1j * s], [-1j * s, c]], dtype=np.complex128)


def _ising_xx(t):
    c, s = np.cos(t / 2.0), np.sin(t / 2.0)
    xx = np.zeros((4, 4), dtype=np.complex128)
    xx[0, 3] = xx[1, 2] = xx[2, 1] = xx[3, 0] = 1.0
    return c * np.eye(4, dtype=np.complex128) - 1j * s * xx


def _mcx_10():
    # controls (c0, c1) with control_values '10', target t.
    # basis index within the gate = c0*4 + c1*2 + t  ->  X acts on rows 4,5.
    m = np.eye(8, dtype=np.complex128)
    m[[4, 5]] = m[[5, 4]]
    return m


def _apply_gate(states, gate, wires, n=4):
    """Apply a k-qubit gate (2^k x 2^k) on `wires` to every column of `states`."""
    k = len(wires)
    ncols = states.shape[1]
    t = states.reshape((2,) * n + (ncols,))
    rest = [ax for ax in range(n) if ax not in wires]
    perm = list(wires) + rest + [n]
    t = np.transpose(t, perm)
    t = gate @ t.reshape(2 ** k, -1)
    t = t.reshape((2,) * n + (ncols,))
    inv = list(np.argsort(perm))
    t = np.transpose(t, inv)
    return t.reshape(2 ** n, ncols)


def build_unitary(w0, w1):
    """Weight-dependent part of QNODE as a 16x16 unitary (input RYs excluded)."""
    U = np.eye(16, dtype=np.complex128)
    l = 0
    for i in range(4):
        U = _apply_gate(U, _ry(w0[0, l, i]), [i])
    U = _apply_gate(U, _ising_xx(w1[l, 0]), [0, 1])
    U = _apply_gate(U, _ising_xx(w1[l, 1]), [2, 3])
    for i in range(4):
        U = _apply_gate(U, _rx(w0[1, l, i]), [i])
    U = _apply_gate(U, _ising_xx(w1[l, 2]), [1, 2])
    U = _apply_gate(U, _ising_xx(w1[l, 3]), [0, 3])
    for i in range(4):
        U = _apply_gate(U, _ry(w0[2, l, i]), [i])
    U = _apply_gate(U, _mcx_10(), [0, 1, 2])
    U = _apply_gate(U, _mcx_10(), [1, 2, 3])
    U = _apply_gate(U, _mcx_10(), [2, 3, 0])
    U = _apply_gate(U, _mcx_10(), [3, 0, 1])
    return U


# ----------------------------------------------------------------------------
# Host-side constant matrices (pooling, measurement signs, bilinear kernel).
# ----------------------------------------------------------------------------
def pool_matrix(H, W):
    """AdaptiveAvgPool2d((2,2)) as an (H*W, 4) matrix (H, W divisible by 2)."""
    P = np.zeros((H * W, 4), dtype=np.float32)
    hh, ww = H // 2, W // 2
    for i in range(2):
        for j in range(2):
            for h in range(i * hh, (i + 1) * hh):
                for w in range(j * ww, (j + 1) * ww):
                    P[h * W + w, i * 2 + j] = 1.0 / (hh * ww)
    return P


def sign_matrix():
    """(128, 16): probs of qlayer k dotted into (<Z0>, <Z2>) -> columns 2k, 2k+1."""
    S = np.zeros((128, 16), dtype=np.float32)
    for k in range(8):
        for b in range(16):
            S[k * 16 + b, 2 * k + 0] = 1.0 - 2.0 * ((b >> 3) & 1)   # Z on wire 0
            S[k * 16 + b, 2 * k + 1] = 1.0 - 2.0 * ((b >> 1) & 1)   # Z on wire 2
    return S


def _bilinear_weights(in_size, out_size):
    """PyTorch F.interpolate bilinear, align_corners=False, 1-D weights."""
    Wm = np.zeros((out_size, in_size), dtype=np.float64)
    scale = in_size / out_size
    for i in range(out_size):
        src = (i + 0.5) * scale - 0.5
        if src < 0.0:
            src = 0.0
        i0 = min(int(np.floor(src)), in_size - 1)
        i1 = min(i0 + 1, in_size - 1)
        w1 = src - i0
        Wm[i, i0] += 1.0 - w1
        Wm[i, i1] += w1
    return Wm


def bilinear_kernel_matrix(out_h, out_w):
    """(16, out_h*out_w): flat 4x4 image -> flat (out_h, out_w) image."""
    Wr = _bilinear_weights(4, out_h)   # (out_h, 4), index [i, a]
    Wc = _bilinear_weights(4, out_w)   # (out_w, 4), index [j, b]
    K = np.einsum('ia,jb->abij', Wr, Wc).reshape(16, out_h * out_w)
    return K.astype(np.float32)


def _round_up(v, m):
    return ((v + m - 1) // m) * m


# ----------------------------------------------------------------------------
# Pallas kernel: entire forward for a tile of TM rows (rows = B*C samples).
# ----------------------------------------------------------------------------
def _qmodule_kernel(x_ref, pth_ref, u_ref, sk_ref, o_ref):
    x = x_ref[...]                                                         # (TM, HW)

    # adaptive avg pool + half-angle factor, all folded into Pt_half.
    half = jnp.dot(x, pth_ref[...], preferred_element_type=jnp.float32)    # (TM, 4)
    c = jnp.cos(half)                                                      # (TM, 4)
    s = jnp.sin(half)                                                      # (TM, 4)

    # |psi0> = (RY(a0) x RY(a1) x RY(a2) x RY(a3)) |0000>, wire 0 = MSB.
    tm = x.shape[0]
    idx = jax.lax.broadcasted_iota(jnp.int32, (tm, 16), 1)
    psi0 = jnp.ones((tm, 16), dtype=jnp.float32)
    for i in range(4):
        bit_set = (idx & (1 << (3 - i))) != 0
        fac = jnp.where(bit_set, s[:, i:i + 1], c[:, i:i + 1])
        psi0 = psi0 * fac                                                  # (TM, 16)

    # 8 quantum layers at once with one MXU pass into [Ur | Ui] (16, 256);
    # split at lane 128 is a free static slice.
    pri = jnp.dot(psi0, u_ref[...], preferred_element_type=jnp.float32)    # (TM, 256)
    pr = pri[:, :128]
    pi = pri[:, 128:]
    probs = pr * pr + pi * pi                                              # (TM, 128)

    # (<Z0>,<Z2>) per layer + bilinear upsample folded into SK (128, OHW_pad).
    o_ref[...] = jnp.dot(probs, sk_ref[...], preferred_element_type=jnp.float32)


def _choose_tm(M, HW, OHW_pad, budget_bytes=24 * 1024 * 1024):
    """Largest row tile (multiple of 8, <=512) whose double-buffered f32
    x-tile + out-tile stays under ~24 MiB (safe on v7x's 64 MiB VMEM)."""
    bytes_per_row = 2 * 4 * (HW + OHW_pad)          # 2 buffers, f32
    cap = max(8, (budget_bytes // bytes_per_row) // 8 * 8)
    return int(min(512, cap, _round_up(M, 8)))


def qmodule_forward(x, UrUi, SK_pad, Pt_half, out_h, out_w):
    """x: (B, C, H, W) float32 (NCHW). Returns (B, C, out_h, out_w) float32."""
    B, C, H, W = x.shape
    M = B * C
    HW = H * W
    OHW = out_h * out_w
    OHW_pad = SK_pad.shape[1]                       # multiple of 128

    TM = _choose_tm(M, HW, OHW_pad)
    Mp = _round_up(M, TM)

    x_flat = x.reshape(M, HW)
    if Mp != M:
        x_flat = jnp.pad(x_flat, ((0, Mp - M), (0, 0)))

    out_flat = pl.pallas_call(
        _qmodule_kernel,
        out_shape=jax.ShapeDtypeStruct((Mp, OHW_pad), jnp.float32),
        grid=(Mp // TM,),
        in_specs=[
            pl.BlockSpec((TM, HW), lambda m: (m, 0)),
            pl.BlockSpec((HW, 4), lambda m: (0, 0)),
            pl.BlockSpec((16, 256), lambda m: (0, 0)),
            pl.BlockSpec((128, OHW_pad), lambda m: (0, 0)),
        ],
        out_specs=pl.BlockSpec((TM, OHW_pad), lambda m: (m, 0)),
        compiler_params=pltpu.CompilerParams(
            dimension_semantics=("parallel",),
            vmem_limit_bytes=48 * 1024 * 1024,
        ),
    )(x_flat, Pt_half, UrUi, SK_pad)

    return out_flat[:M, :OHW].reshape(B, C, out_h, out_w)


# ----------------------------------------------------------------------------
def _numpy_reference(x_np, Pt, Ur, Ui, S, K, out_h, out_w):
    B, C, H, W = x_np.shape
    M = B * C
    xf = x_np.reshape(M, H * W).astype(np.float64)
    pooled = xf @ Pt.astype(np.float64)
    angles = 0.4 * pooled + 0.6 * pooled        # both pools are AvgPool in the module
    c = np.cos(0.5 * angles)
    s = np.sin(0.5 * angles)
    psi0 = np.ones((M, 16))
    for b in range(16):
        f = np.ones(M)
        for i in range(4):
            bit = (b >> (3 - i)) & 1
            f = f * (s[:, i] if bit else c[:, i])
        psi0[:, b] = f
    pr = psi0 @ Ur.astype(np.float64)
    pi = psi0 @ Ui.astype(np.float64)
    probs = pr * pr + pi * pi
    exps = probs @ S.astype(np.float64)
    out = exps @ K.astype(np.float64)
    return out.reshape(B, C, out_h, out_w)


if __name__ == "__main__":
    # Small shapes: B=2, C=4, H=W=16, upsample to 16x16.
    B, C, H, W = 2, 4, 16, 16
    OUT_H, OUT_W = 16, 16

    key = jax.random.PRNGKey(0)
    kx, kw = jax.random.split(key)
    x = jax.random.normal(kx, (B, C, H, W), dtype=jnp.float32)

    # Deterministic TorchLayer-style init: uniform in [0, 2*pi) for each qlayer.
    wkeys = jax.random.split(kw, 16)
    qlayer_weights = []
    for k in range(8):
        w0 = np.asarray(jax.random.uniform(wkeys[2 * k], (3, 1, 4),
                                           minval=0.0, maxval=2.0 * np.pi))
        w1 = np.asarray(jax.random.uniform(wkeys[2 * k + 1], (1, 4),
                                           minval=0.0, maxval=2.0 * np.pi))
        qlayer_weights.append((w0.astype(np.float64), w1.astype(np.float64)))

    # Precompute constant matrices on host.
    Ur_np = np.zeros((16, 128), dtype=np.float32)
    Ui_np = np.zeros((16, 128), dtype=np.float32)
    for k, (w0, w1) in enumerate(qlayer_weights):
        U = build_unitary(w0, w1)          # (16, 16) complex, psi = U @ psi0
        Ur_np[:, k * 16:(k + 1) * 16] = U.real.T.astype(np.float32)
        Ui_np[:, k * 16:(k + 1) * 16] = U.imag.T.astype(np.float32)
    S_np = sign_matrix()                                   # (128, 16)
    K_np = bilinear_kernel_matrix(OUT_H, OUT_W)            # (16, OHW)
    Pt_np = pool_matrix(H, W)                              # (HW, 4)

    # Host-side folding for the kernel:
    #   Pt_half : 0.5 * (0.4 + 0.6) * Pt  (half-angle for RY, avg+avg pooling)
    #   UrUi    : [Ur | Ui]  (16, 256)
    #   SK_pad  : (S @ K) padded on columns to a multiple of 128
    Pt_half_np = (0.5 * Pt_np).astype(np.float32)
    UrUi_np = np.concatenate([Ur_np, Ui_np], axis=1).astype(np.float32)
    SK_np = (S_np.astype(np.float64) @ K_np.astype(np.float64)).astype(np.float32)
    OHW = OUT_H * OUT_W
    OHW_pad = _round_up(OHW, 128)
    SK_pad_np = np.zeros((128, OHW_pad), dtype=np.float32)
    SK_pad_np[:, :OHW] = SK_np

    UrUi = jnp.asarray(UrUi_np)
    SK_pad = jnp.asarray(SK_pad_np)
    Pt_half = jnp.asarray(Pt_half_np)

    out = qmodule_forward(x, UrUi, SK_pad, Pt_half, OUT_H, OUT_W)
    out = jax.block_until_ready(out)

    ref = _numpy_reference(np.asarray(x), Pt_np, Ur_np, Ui_np, S_np, K_np,
                           OUT_H, OUT_W)
    np.testing.assert_allclose(np.asarray(out), ref, rtol=5e-2, atol=5e-2)

    print("KERNEL_OK")
</pallas_src>

<mosaic_0001>
module attributes {stable_mosaic.version = 11 : i64} {
  func.func @_qmodule_kernel(%arg0: i32, %arg1: memref<8x256xf32, #tpu.memory_space<vmem>>, %arg2: memref<256x4xf32, #tpu.memory_space<vmem>>, %arg3: memref<16x256xf32, #tpu.memory_space<vmem>>, %arg4: memref<128x256xf32, #tpu.memory_space<vmem>>, %arg5: memref<8x256xf32, #tpu.memory_space<vmem>>) attributes {dimension_semantics = [#tpu.dimension_semantics<parallel>], iteration_bounds = array<i64: 1>, scalar_prefetch = 0 : i64, scratch_operands = 0 : i64, tpu.core_type = #tpu.core_type<tc>, window_params = [{transform_indices = @transform_0, window_bounds = array<i64: 8, 256>}, {pipeline_mode = #tpu.pipeline_mode<synchronous>, transform_indices = @transform_1, window_bounds = array<i64: 256, 4>}, {pipeline_mode = #tpu.pipeline_mode<synchronous>, transform_indices = @transform_2, window_bounds = array<i64: 16, 256>}, {pipeline_mode = #tpu.pipeline_mode<synchronous>, transform_indices = @transform_3, window_bounds = array<i64: 128, 256>}, {transform_indices = @transform_4, window_bounds = array<i64: 8, 256>}]} {
    %c0 = arith.constant 0 : index
    %c0_0 = arith.constant 0 : index
    %0 = vector.load %arg1[%c0, %c0_0] : memref<8x256xf32, #tpu.memory_space<vmem>>, vector<8x256xf32>
    %c0_1 = arith.constant 0 : index
    %c0_2 = arith.constant 0 : index
    %1 = vector.load %arg2[%c0_1, %c0_2] : memref<256x4xf32, #tpu.memory_space<vmem>>, vector<256x4xf32>
    %cst = arith.constant dense<0.000000e+00> : vector<8x4xf32>
    %2 = tpu.matmul %0, %1, %cst {dimension_numbers = #tpu.dot_dimension_numbers<[1], [0], [0], [1], [0, 0, 1, 1], [], []>} : vector<8x256xf32>, vector<256x4xf32>, vector<8x4xf32> -> vector<8x4xf32>
    %3 = math.cos %2 : vector<8x4xf32>
    %4 = math.sin %2 : vector<8x4xf32>
    %5 = tpu.iota {dimensions = array<i32: 1>} : vector<8x16xi32>
    %cst_3 = arith.constant 1.000000e+00 : f32
    %6 = vector.broadcast %cst_3 : f32 to vector<8x16xf32>
    %c8_i32 = arith.constant 8 : i32
    %7 = vector.broadcast %c8_i32 : i32 to vector<8x16xi32>
    %8 = arith.andi %5, %7 : vector<8x16xi32>
    %c0_i32 = arith.constant 0 : i32
    %9 = vector.broadcast %c0_i32 : i32 to vector<8x16xi32>
    %10 = arith.cmpi ne, %8, %9 : vector<8x16xi32>
    %11 = vector.extract_strided_slice %4 {offsets = [0, 0], sizes = [8, 1], strides = [1, 1]} : vector<8x4xf32> to vector<8x1xf32>
    %12 = vector.extract_strided_slice %3 {offsets = [0, 0], sizes = [8, 1], strides = [1, 1]} : vector<8x4xf32> to vector<8x1xf32>
    %13 = vector.shape_cast %11 : vector<8x1xf32> to vector<8x1xf32>
    %14 = vector.broadcast %13 : vector<8x1xf32> to vector<8x16xf32>
    %15 = vector.shape_cast %12 : vector<8x1xf32> to vector<8x1xf32>
    %16 = vector.broadcast %15 : vector<8x1xf32> to vector<8x16xf32>
    %17 = arith.select %10, %14, %16 : vector<8x16xi1>, vector<8x16xf32>
    %18 = arith.mulf %6, %17 : vector<8x16xf32>
    %c4_i32 = arith.constant 4 : i32
    %19 = vector.broadcast %c4_i32 : i32 to vector<8x16xi32>
    %20 = arith.andi %5, %19 : vector<8x16xi32>
    %c0_i32_4 = arith.constant 0 : i32
    %21 = vector.broadcast %c0_i32_4 : i32 to vector<8x16xi32>
    %22 = arith.cmpi ne, %20, %21 : vector<8x16xi32>
    %23 = vector.extract_strided_slice %4 {offsets = [0, 1], sizes = [8, 1], strides = [1, 1]} : vector<8x4xf32> to vector<8x1xf32>
    %24 = vector.extract_strided_slice %3 {offsets = [0, 1], sizes = [8, 1], strides = [1, 1]} : vector<8x4xf32> to vector<8x1xf32>
    %25 = vector.shape_cast %23 : vector<8x1xf32> to vector<8x1xf32>
    %26 = vector.broadcast %25 : vector<8x1xf32> to vector<8x16xf32>
    %27 = vector.shape_cast %24 : vector<8x1xf32> to vector<8x1xf32>
    %28 = vector.broadcast %27 : vector<8x1xf32> to vector<8x16xf32>
    %29 = arith.select %22, %26, %28 : vector<8x16xi1>, vector<8x16xf32>
    %30 = arith.mulf %18, %29 : vector<8x16xf32>
    %c2_i32 = arith.constant 2 : i32
    %31 = vector.broadcast %c2_i32 : i32 to vector<8x16xi32>
    %32 = arith.andi %5, %31 : vector<8x16xi32>
    %c0_i32_5 = arith.constant 0 : i32
    %33 = vector.broadcast %c0_i32_5 : i32 to vector<8x16xi32>
    %34 = arith.cmpi ne, %32, %33 : vector<8x16xi32>
    %35 = vector.extract_strided_slice %4 {offsets = [0, 2], sizes = [8, 1], strides = [1, 1]} : vector<8x4xf32> to vector<8x1xf32>
    %36 = vector.extract_strided_slice %3 {offsets = [0, 2], sizes = [8, 1], strides = [1, 1]} : vector<8x4xf32> to vector<8x1xf32>
    %37 = vector.shape_cast %35 : vector<8x1xf32> to vector<8x1xf32>
    %38 = vector.broadcast %37 : vector<8x1xf32> to vector<8x16xf32>
    %39 = vector.shape_cast %36 : vector<8x1xf32> to vector<8x1xf32>
    %40 = vector.broadcast %39 : vector<8x1xf32> to vector<8x16xf32>
    %41 = arith.select %34, %38, %40 : vector<8x16xi1>, vector<8x16xf32>
    %42 = arith.mulf %30, %41 : vector<8x16xf32>
    %c1_i32 = arith.constant 1 : i32
    %43 = vector.broadcast %c1_i32 : i32 to vector<8x16xi32>
    %44 = arith.andi %5, %43 : vector<8x16xi32>
    %c0_i32_6 = arith.constant 0 : i32
    %45 = vector.broadcast %c0_i32_6 : i32 to vector<8x16xi32>
    %46 = arith.cmpi ne, %44, %45 : vector<8x16xi32>
    %47 = vector.extract_strided_slice %4 {offsets = [0, 3], sizes = [8, 1], strides = [1, 1]} : vector<8x4xf32> to vector<8x1xf32>
    %48 = vector.extract_strided_slice %3 {offsets = [0, 3], sizes = [8, 1], strides = [1, 1]} : vector<8x4xf32> to vector<8x1xf32>
    %49 = vector.shape_cast %47 : vector<8x1xf32> to vector<8x1xf32>
    %50 = vector.broadcast %49 : vector<8x1xf32> to vector<8x16xf32>
    %51 = vector.shape_cast %48 : vector<8x1xf32> to vector<8x1xf32>
    %52 = vector.broadcast %51 : vector<8x1xf32> to vector<8x16xf32>
    %53 = arith.select %46, %50, %52 : vector<8x16xi1>, vector<8x16xf32>
    %54 = arith.mulf %42, %53 : vector<8x16xf32>
    %c0_7 = arith.constant 0 : index
    %c0_8 = arith.constant 0 : index
    %55 = vector.load %arg3[%c0_7, %c0_8] : memref<16x256xf32, #tpu.memory_space<vmem>>, vector<16x256xf32>
    %cst_9 = arith.constant dense<0.000000e+00> : vector<8x256xf32>
    %56 = tpu.matmul %54, %55, %cst_9 {dimension_numbers = #tpu.dot_dimension_numbers<[1], [0], [0], [1], [0, 0, 1, 1], [], []>} : vector<8x16xf32>, vector<16x256xf32>, vector<8x256xf32> -> vector<8x256xf32>
    %57 = vector.extract_strided_slice %56 {offsets = [0, 0], sizes = [8, 128], strides = [1, 1]} : vector<8x256xf32> to vector<8x128xf32>
    %58 = vector.extract_strided_slice %56 {offsets = [0, 128], sizes = [8, 128], strides = [1, 1]} : vector<8x256xf32> to vector<8x128xf32>
    %59 = arith.mulf %57, %57 : vector<8x128xf32>
    %60 = arith.mulf %58, %58 : vector<8x128xf32>
    %61 = arith.addf %59, %60 : vector<8x128xf32>
    %c0_10 = arith.constant 0 : index
    %c0_11 = arith.constant 0 : index
    %62 = vector.load %arg4[%c0_10, %c0_11] : memref<128x256xf32, #tpu.memory_space<vmem>>, vector<128x256xf32>
    %cst_12 = arith.constant dense<0.000000e+00> : vector<8x256xf32>
    %63 = tpu.matmul %61, %62, %cst_12 {dimension_numbers = #tpu.dot_dimension_numbers<[1], [0], [0], [1], [0, 0, 1, 1], [], []>} : vector<8x128xf32>, vector<128x256xf32>, vector<8x256xf32> -> vector<8x256xf32>
    %c0_13 = arith.constant 0 : index
    %c0_14 = arith.constant 0 : index
    %64 = vector.load %arg5[%c0_13, %c0_14] : memref<8x256xf32, #tpu.memory_space<vmem>>, vector<8x256xf32>
    tpu.vector_store %arg5[%c0_13, %c0_14], %63 {strides = array<i32>} : memref<8x256xf32, #tpu.memory_space<vmem>>, vector<8x256xf32>,
    return
  }
  func.func @transform_0(%arg0: i32) -> (i32, i32) {
    %c0_i32 = arith.constant 0 : i32
    %c0_i32_0 = arith.constant 0 : i32
    return %arg0, %c0_i32 : i32, i32
  }
  func.func @transform_1(%arg0: i32) -> (i32, i32) {
    %c0_i32 = arith.constant 0 : i32
    %c0_i32_0 = arith.constant 0 : i32
    %c0_i32_1 = arith.constant 0 : i32
    return %c0_i32, %c0_i32_0 : i32, i32
  }
  func.func @transform_2(%arg0: i32) -> (i32, i32) {
    %c0_i32 = arith.constant 0 : i32
    %c0_i32_0 = arith.constant 0 : i32
    %c0_i32_1 = arith.constant 0 : i32
    return %c0_i32, %c0_i32_0 : i32, i32
  }
  func.func @transform_3(%arg0: i32) -> (i32, i32) {
    %c0_i32 = arith.constant 0 : i32
    %c0_i32_0 = arith.constant 0 : i32
    %c0_i32_1 = arith.constant 0 : i32
    return %c0_i32, %c0_i32_0 : i32, i32
  }
  func.func @transform_4(%arg0: i32) -> (i32, i32) {
    %c0_i32 = arith.constant 0 : i32
    %c0_i32_0 = arith.constant 0 : i32
    return %arg0, %c0_i32 : i32, i32
  }
}

</mosaic_0001>

<bundles_post_ra>
// kernel: tpu_custom_call.1
= control target key start
LH: loop header
LB: loop body
LE: loop exit
PB: predicated region body
PF: predicated region fallthrough
CT: control target
= control target key end

     0   :  { %9 = vsyncpa [#allocation3], 0  ;;  %s1068_s0 = inlined_call_operand.vmem [shape: f32[8,256], index: 0, kind: input, shape index: {}]   ;;  %s1069_s1 = inlined_call_operand.vmem [shape: f32[256,4], index: 1, kind: input, shape index: {}]   ;;  %s1070_s2 = inlined_call_operand.hbm [shape: f32[16,256], index: 2, kind: input, shape index: {}]   ;;  %s1071_s3 = inlined_call_operand.vmem [shape: f32[128,256], index: 3, kind: input, shape index: {}]   ;;  %s1072_s4 = inlined_call_operand.hbm [shape: f32[8,256], index: 4, kind: output, shape index: {}]  }
   0x1   :  { %10 = vsyncpa [#allocation4], 0  ;;  %s785_s15 = smov [#allocation2]   ;;  %s737_s19 = scalar_lea.hbm %s1070_s2, 512 }
   0x2   :  { %s20_s16 = sshll.u32 %s785_s15, 4  ;;  %p738_p0 = scmp.ne.s32.totalorder %s1070_s2, %s737_s19  ;;  %s21_s16 = int_to_ptr.vmem [resolvable:$true] %s20_s16 }
   0x3   :  { %p741_p1 = scmp.lt.u32.totalorder %s737_s19, %s1070_s2 }
   0x5   :  { %p743_p2 = pnand %p741_p1, %p738_p0 }
   0x7   :  { %746 = shalt.err (!%p743_p2)
}
   0x8   :  { %s747_s24 = scalar_lea.vmem %s21_s16, 512  ;;  %p752_p4 = scmp.lt.s32.totalorder %s21_s16, %s21_s16 }
   0x9   :  { %p748_p3 = scmp.ne.s32.totalorder %s21_s16, %s747_s24  ;;  %p753_p5 = scmp.lt.s32.totalorder %s747_s24, %s747_s24 }
   0xb   :  { %p754_p6 = por %p753_p5, %p752_p4 }
   0xd   :  { %p755_p7 = pnand %p754_p6, %p748_p3 }
   0xf   :  { %758 = shalt.err (!%p755_p7)
}
  0x10   :  { %s786_s25 = smov 256   ;;  %s787_s26 = smov 16  }
  0x11   :  { %26 = dma.hbm_to_vmem [thread:$0]  %s1070_s2, 512, %s21_s16, [#allocation3], %s786_s25, %s786_s25, %s787_s26  }
  0x12   :  { %781 = dma.done.wait [#allocation3], 512  }
  0x13   :  { %782 = vsyncadd [#allocation3], 4294966784  ;;  %v50_v0 = vld [vmem:[%s1069_s1 + $0x80] sm:$0xff]  ;;  %v51_v1 = vld [vmem:[%s1069_s1 + $0x88] sm:$0xff]  ;;  %v788_v50 = vmov 1   ;;  %v789_v51 = vmov 0  }
  0x14   :  { %v34_v2 = vld [vmem:[%s1069_s1] sm:$0xff]  ;;  %v640_v3 = vpack.c.bf16 %v51_v1, %v50_v0  ;;  %v35_v4 = vld [vmem:[%s1069_s1 + $0x8] sm:$0xff]  ;;  %v52_v5 = vld [vmem:[%s1069_s1 + $0x90] sm:$0xff]  ;;  %728 = vset.pattern.permute.xlu1 %v788_v50  ;;  %727 = vset.pattern.permute.xlu0 %v789_v51  ;;  %v790_v1 = vmov 683565275   ;;  %s799_s20 = smov [#allocation5]  }
  0x15   :  { %v53_v6 = vld [vmem:[%s1069_s1 + $0x98] sm:$0xff]  ;;  %v642_v7 = vpack.c.bf16 %v35_v4, %v34_v2  ;;  %v36_v9 = vld [vmem:[%s1069_s1 + $0x10] sm:$0xff]  ;;  %v54_v11 = vld [vmem:[%s1069_s1 + $0xa0] sm:$0xff]  ;;  %s587_s21 = sshll.u32 %s799_s20, 4  ;;  %s588_s21 = int_to_ptr.vmem [resolvable:$true] %s587_s21 }
  0x16   :  { %v644_v8 = vpack.c.bf16 %v53_v6, %v52_v5  ;;  %v37_v10 = vld [vmem:[%s1069_s1 + $0x18] sm:$0xff]  ;;  %641 = vmatprep.subr.bf16.mxu0 %v640_v3  ;;  %v55_v12 = vld [vmem:[%s1069_s1 + $0xa8] sm:$0xff]  ;;  %v38_v15 = vld [vmem:[%s1069_s1 + $0x20] sm:$0xff]  ;;  %v791_v3 = vmov 2475754826   ;;  %s759_s22 = scalar_lea.vmem %s588_s21, 256  ;;  %p764_p9 = scmp.lt.s32.totalorder %s588_s21, %s588_s21 }
  0x17   :  { %643 = vmatpush3.bf16.msra.mxu0 %v642_v7  ;;  %v646_v13 = vpack.c.bf16 %v37_v10, %v36_v9  ;;  %v648_v14 = vpack.c.bf16 %v55_v12, %v54_v11  ;;  %v39_v16 = vld [vmem:[%s1069_s1 + $0x28] sm:$0xff]  ;;  %v56_v17 = vld [vmem:[%s1069_s1 + $0xb0] sm:$0xff]  ;;  %v57_v18 = vld [vmem:[%s1069_s1 + $0xb8] sm:$0xff]  ;;  %v792_v6 = vmov 2131351028   ;;  %p760_p8 = scmp.ne.s32.totalorder %s588_s21, %s759_s22  ;;  %p765_p10 = scmp.lt.s32.totalorder %s759_s22, %s759_s22 }
  0x18   :  { %645 = vmatprep.subr.bf16.mxu0 %v644_v8  ;;  %v650_v19 = vpack.c.bf16 %v39_v16, %v38_v15  ;;  %v652_v20 = vpack.c.bf16 %v57_v18, %v56_v17  ;;  %v40_v21 = vld [vmem:[%s1069_s1 + $0x30] sm:$0xff]  ;;  %v41_v22 = vld [vmem:[%s1069_s1 + $0x38] sm:$0xff]  ;;  %v58_v23 = vld [vmem:[%s1069_s1 + $0xc0] sm:$0xff]  ;;  %v793_v9 = vmov 2102212464  }
  0x19   :  { %v59_v24 = vld [vmem:[%s1069_s1 + $0xc8] sm:$0xff]  ;;  %v654_v26 = vpack.c.bf16 %v41_v22, %v40_v21  ;;  %v42_v28 = vld [vmem:[%s1069_s1 + $0x40] sm:$0xff]  ;;  %v60_v30 = vld [vmem:[%s1069_s1 + $0xd0] sm:$0xff]  ;;  %v794_v12 = vmov 920167782   ;;  %p766_p11 = por %p765_p10, %p764_p9 }
  0x1a   :  { %v33_v25 = vld [vmem:[%s1068_s0 + $0x8] sm:$0xff]  ;;  %v656_v27 = vpack.c.bf16 %v59_v24, %v58_v23  ;;  %v61_v31 = vld [vmem:[%s1069_s1 + $0xd8] sm:$0xff]  ;;  %v44_v34 = vld [vmem:[%s1069_s1 + $0x50] sm:$0xff]  ;;  %v795_v15 = vmov 1326507024  }
  0x1b   :  { %647 = vmatpush3.bf16.msra.mxu0 %v646_v13  ;;  %130 = vmatprep.mubr.f32.mxu0 %v33_v25  ;;  %v43_v29 = vld [vmem:[%s1069_s1 + $0x48] sm:$0xff]  ;;  %v660_v33 = vpack.c.bf16 %v61_v31, %v60_v30  ;;  %v45_v35 = vld [vmem:[%s1069_s1 + $0x58] sm:$0xff]  ;;  %v62_v36 = vld [vmem:[%s1069_s1 + $0xe0] sm:$0xff]  ;;  %p767_p12 = pnand %p766_p11, %p760_p8 }
  0x1c   :  { %649 = vmatprep.subr.bf16.mxu0 %v648_v14  ;;  %v658_v32 = vpack.c.bf16 %v43_v29, %v42_v28  ;;  %v63_v37 = vld [vmem:[%s1069_s1 + $0xe8] sm:$0xff]  ;;  %v662_v38 = vpack.c.bf16 %v45_v35, %v44_v34  ;;  %v46_v40 = vld [vmem:[%s1069_s1 + $0x60] sm:$0xff]  ;;  %v64_v42 = vld [vmem:[%s1069_s1 + $0xf0] sm:$0xff] }
  0x1d   :  { %v664_v39 = vpack.c.bf16 %v63_v37, %v62_v36  ;;  %v47_v41 = vld [vmem:[%s1069_s1 + $0x68] sm:$0xff]  ;;  %v65_v43 = vld [vmem:[%s1069_s1 + $0xf8] sm:$0xff]  ;;  %v48_v46 = vld [vmem:[%s1069_s1 + $0x70] sm:$0xff] }
  0x1e   :  { %v666_v44 = vpack.c.bf16 %v47_v41, %v46_v40  ;;  %v668_v45 = vpack.c.bf16 %v65_v43, %v64_v42  ;;  %v49_v47 = vld [vmem:[%s1069_s1 + $0x78] sm:$0xff]  ;;  %v32_v49 = vld [vmem:[%s1068_s0] sm:$0xff] }
  0x1f   :  { %651 = vmatpush3.bf16.msra.mxu0 %v650_v19  ;;  %v670_v48 = vpack.c.bf16 %v49_v47, %v48_v46 }
  0x20   :  { %653 = vmatprep.subr.bf16.mxu0 %v652_v20 }
  0x23   :  { %655 = vmatpush3.bf16.msra.mxu0 %v654_v26 }
  0x24   :  { %657 = vmatprep.subr.bf16.mxu0 %v656_v27 }
  0x27   :  { %659 = vmatpush3.bf16.msra.mxu0 %v658_v32 }
  0x28   :  { %661 = vmatprep.subr.bf16.mxu0 %v660_v33 }
  0x2b   :  { %663 = vmatpush3.bf16.msra.mxu0 %v662_v38 }
  0x2c   :  { %665 = vmatprep.subr.bf16.mxu0 %v664_v39 }
  0x2f   :  { %667 = vmatpush3.bf16.msra.mxu0 %v666_v44 }
  0x30   :  { %669 = vmatprep.subr.bf16.mxu0 %v668_v45 }
  0x33   :  { %671 = vmatpush3.bf16.msra.mxu0 %v670_v48 }
  0x36   :  { %131 = vmatmul.mubr.f32.vlgmr.msra.gmra.mrb[0].mxu0 %v32_v49 }
 0x109   :  { %v637_v52 = vpop.f32.mrb[0].mxu0 }
 0x10a   :  { %v638_v53 = vpop.f32.mrb[1].mxu0 }
 0x10b   :  { %v939_v54 = vadd.f32 %v638_v53, %v637_v52 }
 0x10d   :  { %v139_v55 = vand.u32 2139095040, %v939_v54  ;;  %v136_v59 = vand.u32 2147483647, %v939_v54  ;;  %vm138_vm7 = vcmp.lt.s32.totalorder %v939_v54, 0  ;;  %vm228_vm14 = vweird.f32 %v939_v54 }
 0x10f   :  { %v140_v56 = vshrl.u32 %v139_v55, 23  ;;  %v143_v62 = vand.u32 8388607, %v136_v59  ;;  %vm137_vm8 = vcmp.le.f32.partialorder %v136_v59, 0.7853982 }
 0x111   :  { %v596_v57 = vadd.s32 4294967169, %v140_v56  ;;  %v144_v17 = vor.u32 8388608, %v143_v62 }
 0x113   :  { %v146_v58 = vadd.s32 1, %v596_v57  ;;  %v184_v31 = vshll.u32 %v144_v17, 8 }
 0x115   :  { %vm147_vm0 = vcmp.gt.s32.totalorder %v146_v58, 0 }
 0x116   :  { %v148_v60 = vsel %vm147_vm0, %v146_v58, 0 }
 0x117   :  { %v150_v61 = vand.u32 31, %v148_v60  ;;  %v149_v0 = vshrl.u32 %v148_v60, 5 }
 0x119   :  { %v151_v63 = vsub.s32 32, %v150_v61  ;;  %v153_v2 = vshll.u32 %v790_v1, %v150_v61  ;;  %v156_v4 = vshll.u32 %v791_v3, %v150_v61  ;;  %v159_v8 = vshll.u32 %v792_v6, %v150_v61 }
 0x11a   :  { %v162_v11 = vshll.u32 %v793_v9, %v150_v61  ;;  %v165_v14 = vshll.u32 %v794_v12, %v150_v61  ;;  %vm168_vm1 = vcmp.lt.s32.totalorder %v149_v0, 1  ;;  %vm171_vm2 = vcmp.lt.s32.totalorder %v149_v0, 4 }
 0x11b   :  { %v154_v5 = vshrl.u32 %v791_v3, %v151_v63  ;;  %v157_v7 = vshrl.u32 %v792_v6, %v151_v63  ;;  %v160_v10 = vshrl.u32 %v793_v9, %v151_v63  ;;  %v163_v13 = vshrl.u32 %v794_v12, %v151_v63 }
 0x11c   :  { %v166_v16 = vshrl.u32 %v795_v15, %v151_v63  ;;  %v152_v26 = vshrl.u32 %v790_v1, %v151_v63  ;;  %vm170_vm3 = vcmp.lt.s32.totalorder %v149_v0, 3  ;;  %vm169_vm4 = vcmp.lt.s32.totalorder %v149_v0, 2 }
 0x11d   :  { %v155_v18 = vor.u32 %v154_v5, %v153_v2  ;;  %v158_v19 = vor.u32 %v157_v7, %v156_v4  ;;  %v161_v20 = vor.u32 %v160_v10, %v159_v8  ;;  %v164_v21 = vor.u32 %v163_v13, %v162_v11 }
 0x11e   :  { %v167_v22 = vor.u32 %v166_v16, %v165_v14 }
 0x11f   :  { %v173_v23 = vsel %vm171_vm2, %v161_v20, 2102212464  ;;  %v176_v24 = vsel %vm168_vm1, %v155_v18, %v158_v19  ;;  %v180_v25 = vsel %vm168_vm1, %v158_v19, %v161_v20  ;;  %v177_v27 = vsel %vm171_vm2, %v164_v21, 920167782 }
 0x120   :  { %v181_v28 = vsel %vm171_vm2, %v167_v22, 1326507024  ;;  %v178_v29 = vsel %vm170_vm3, %v161_v20, %v177_v27  ;;  %v172_v32 = vsel %vm168_vm1, %v152_v26, %v155_v18  ;;  %v174_v33 = vsel %vm170_vm3, %v158_v19, %v173_v23  ;;  %v397_v26 = vld [vmem:[#allocation2 + $0x18] sm:$0xff] }
 0x121   :  { %v182_v30 = vsel %vm170_vm3, %v164_v21, %v181_v28  ;;  %v179_v34 = vsel %vm169_vm4, %v176_v24, %v178_v29  ;;  %v175_v40 = vsel %vm169_vm4, %v172_v32, %v174_v33  ;;  %v796_v24 = vmov 2   ;;  %v394_v28 = vld [vmem:[#allocation2] sm:$0xff]  ;;  %v396_v29 = vld [vmem:[#allocation2 + $0x10] sm:$0xff]  ;;  %v477_v32 = vld [vmem:[%s1071_s3 + $0x8] sm:$0xff] }
 0x122   :  { %v183_v35 = vsel %vm169_vm4, %v180_v25, %v182_v30  ;;  %v948_v38 = vmul.u32.u64.low %v184_v31, %v179_v34  ;;  %v949_v39 = vmul.u32.u64.high %v184_v31, %v179_v34, %v948_v38  ;;  %v191_v42 = vmul.u32 %v184_v31, %v175_v40  ;;  %v395_v25 = vld [vmem:[#allocation2 + $0x8] sm:$0xff]  ;;  %v479_v33 = vld [vmem:[%s1071_s3 + $0x18] sm:$0xff] }
 0x123   :  { %v945_v36 = vmul.u32.u64.low %v184_v31, %v183_v35  ;;  %v946_v37 = vmul.u32.u64.high %v184_v31, %v183_v35, %v945_v36  ;;  %v672_v27 = vpack.c.bf16 %v397_v26, %v395_v25  ;;  %v674_v30 = vpack.c.bf16 %v396_v29, %v394_v28  ;;  %v501_v25 = vld [vmem:[%s1071_s3 + $0xc8] sm:$0xff]  ;;  %v503_v26 = vld [vmem:[%s1071_s3 + $0xd8] sm:$0xff]  ;;  %v500_v29 = vld [vmem:[%s1071_s3 + $0xc0] sm:$0xff] }
 0x124   :  { %v194_v41 = vadd.s32 1, %v949_v39  ;;  %v798_v31 = vmov 0.0   ;;  %v676_v34 = vpack.c.bf16 %v479_v33, %v477_v32  ;;  %v343_v35 = vlaneseq  ;;  %v507_v32 = vld [vmem:[%s1071_s3 + $0xf8] sm:$0xff] }
 0x125   :  { %vm193_vm5 = vc.u32 %v946_v37, %v948_v38  ;;  %v192_v55 = vadd.s32 %v948_v38, %v946_v37  ;;  %673 = vmatprep.subr.bf16.mxu1 %v672_v27  ;;  %466 = vmatprep.mubr.f32.mxu1 %v798_v31  ;;  %vm398_vm4 = vcmask 130048   ;;  %v700_v28 = vpack.c.bf16 %v503_v26, %v501_v25 }
 0x126   :  { %v195_v43 = vsel %vm193_vm5, %v194_v41, %v949_v39  ;;  %675 = vmatpush1.bf16.msra.mxu1 %v674_v30  ;;  %v344_v36 = vand.u32 127, %v343_v35  ;;  %v506_v35 = vld [vmem:[%s1071_s3 + $0xf0] sm:$0xff] }
 0x127   :  { %v196_v44 = vadd.s32 %v195_v43, %v191_v42  ;;  %677 = vmatprep.subr.bf16.mxu1 %v676_v34  ;;  %v504_v34 = vld [vmem:[%s1071_s3 + $0xe0] sm:$0xff] }
 0x128   :  { %v358_v39 = vand.u32 4, %v344_v36  ;;  %v345_v40 = vand.u32 8, %v344_v36  ;;  %v370_v43 = vand.u32 2, %v344_v36 }
 0x129   :  { %v197_v45 = vadd.s32 536870912, %v196_v44 }
 0x12a   :  { %vm359_vm0 = vcmp.ne.s32.totalorder %v358_v39, 0  ;;  %vm346_vm1 = vcmp.ne.s32.totalorder %v345_v40, 0  ;;  %vm371_vm2 = vcmp.ne.s32.totalorder %v370_v43, 0 }
 0x12b   :  { %v198_v46 = vshrl.u32 %v197_v45, 30 }
 0x12d   :  { %v199_v47 = vshll.u32 %v198_v46, 30  ;;  %v222_v4 = vsub.s32 4, %v198_v46 }
 0x12f   :  { %v200_v48 = vsub.s32 %v196_v44, %v199_v47  ;;  %v223_v7 = vsel %vm138_vm7, %v222_v4, %v198_v46  ;;  %v382_v44 = vand.u32 1, %v344_v36  ;;  %v706_v36 = vpack.c.bf16 %v506_v35, %v504_v34 }
 0x130   :  { %v225_v9 = vsel %vm137_vm8, 0, %v223_v7  ;;  %v486_v7 = vld [vmem:[%s1071_s3 + $0x50] sm:$0xff] }
 0x131   :  { %v202_v49 = vsub.s32 0, %v200_v48  ;;  %v332_v10 = vadd.s32 3, %v225_v9  ;;  %v229_v12 = vand.u32 3, %v225_v9  ;;  %vm383_vm3 = vcmp.ne.s32.totalorder %v382_v44, 0  ;;  %v491_v9 = vld [vmem:[%s1071_s3 + $0x78] sm:$0xff] }
 0x133   :  { %v597_v50 = vmin.u32 %v202_v49, %v200_v48  ;;  %v333_v11 = vand.u32 3, %v332_v10  ;;  %vm231_vm11 = vcmp.eq.s32.totalorder %v229_v12, 0  ;;  %vm234_vm12 = vcmp.eq.s32.totalorder %v229_v12, 2 }
 0x134   :  { %vm230_vm15 = vcmp.lt.s32.totalorder %v229_v12, 2  ;;  %v488_v12 = vld [vmem:[%s1071_s3 + $0x60] sm:$0xff] }
 0x135   :  { %v204_v51 = vclz %v597_v50  ;;  %vm338_vm9 = vcmp.eq.s32.totalorder %v333_v11, 2  ;;  %vm335_vm10 = vcmp.eq.s32.totalorder %v333_v11, 0  ;;  %vm334_vm13 = vcmp.lt.s32.totalorder %v333_v11, 2 }
 0x137   :  { %v598_v52 = vadd.s32 4294967294, %v204_v51  ;;  %v476_v51 = vld [vmem:[%s1071_s3] sm:$0xff] }
 0x139   :  { %vm599_vm6 = vcmp.lt.s32.totalorder %v598_v52, 0 }
 0x13a   :  { %v207_v53 = vsel %vm599_vm6, 0, %v598_v52  ;;  %v478_v52 = vld [vmem:[%s1071_s3 + $0x10] sm:$0xff] }
 0x13b   :  { %v208_v56 = vsub.s32 32, %v207_v53  ;;  %v212_v57 = vsub.s32 4294967266, %v207_v53  ;;  %v209_v58 = vshll.u32 %v200_v48, %v207_v53  ;;  %v481_v53 = vld [vmem:[%s1071_s3 + $0x28] sm:$0xff] }
 0x13d   :  { %v210_v60 = vshrl.u32 %v192_v55, %v208_v56  ;;  %v213_v61 = vadd.s32 127, %v212_v57  ;;  %v483_v55 = vld [vmem:[%s1071_s3 + $0x38] sm:$0xff] }
 0x13f   :  { %v211_v62 = vor.u32 %v210_v60, %v209_v58  ;;  %v214_v63 = vshll.u32 %v213_v61, 23  ;;  %v678_v61 = vpack.c.bf16 %v478_v52, %v476_v51 }
 0x141   :  { %v215_v0 = vor.u32 4788187, %v214_v63  ;;  %v218_v2 = vcvt.s32.f32 %v211_v62  ;;  %v680_v63 = vpack.c.bf16 %v483_v55, %v481_v53 }
 0x143   :  { %v216_v1 = vand.u32 2147483647, %v215_v0  ;;  %v480_v0 = vld [vmem:[%s1071_s3 + $0x20] sm:$0xff] }
 0x145   :  { %v219_v3 = vmul.f32 %v218_v2, %v216_v1  ;;  %v482_v1 = vld [vmem:[%s1071_s3 + $0x30] sm:$0xff]  ;;  %v485_v2 = vld [vmem:[%s1071_s3 + $0x48] sm:$0xff] }
 0x146   :  { %v682_v4 = vpack.c.bf16 %v482_v1, %v480_v0 }
 0x147   :  { %v220_v5 = vxor.u32 2147483648, %v219_v3 }
 0x149   :  { %v221_v6 = vsel %vm138_vm7, %v220_v5, %v219_v3  ;;  %v487_v3 = vld [vmem:[%s1071_s3 + $0x58] sm:$0xff] }
 0x14a   :  { %v224_v8 = vsel %vm137_vm8, %v939_v54, %v221_v6  ;;  %v797_v54 = vmov 3   ;;  %v684_v5 = vpack.c.bf16 %v487_v3, %v485_v2  ;;  %v484_v6 = vld [vmem:[%s1071_s3 + $0x40] sm:$0xff] }
 0x14b   :  { %733 = vcosq.f32 %v224_v8  ;;  %v686_v10 = vpack.c.bf16 %v486_v7, %v484_v6 }
 0x14c   :  { %735 = vsinq.f32 %v224_v8  ;;  %v489_v8 = vld [vmem:[%s1071_s3 + $0x68] sm:$0xff] }
 0x14d   :  { %v688_v11 = vpack.c.bf16 %v491_v9, %v489_v8 }
 0x155   :  { %v734_v13 = vpop.eup %733 }
 0x156   :  { %v736_v14 = vpop.eup %735  ;;  %v235_v15 = vxor.u32 2147483648, %v734_v13 }
 0x157   :  { %v232_v16 = vxor.u32 2147483648, %v736_v14 }
 0x158   :  { %v340_v17 = vsel %vm338_vm9, %v235_v15, %v736_v14  ;;  %v236_v19 = vsel %vm234_vm12, %v235_v15, %v736_v14  ;;  %v493_v14 = vld [vmem:[%s1071_s3 + $0x88] sm:$0xff]  ;;  %v495_v15 = vld [vmem:[%s1071_s3 + $0x98] sm:$0xff] }
 0x159   :  { %v337_v59 = vsel %vm335_vm10, %v734_v13, %v232_v16  ;;  %v233_v18 = vsel %vm231_vm11, %v734_v13, %v232_v16  ;;  %v490_v13 = vld [vmem:[%s1071_s3 + $0x70] sm:$0xff] }
 0x15a   :  { %v341_v20 = vsel %vm334_vm13, %v337_v59, %v340_v17  ;;  %v237_v22 = vsel %vm230_vm15, %v233_v18, %v236_v19  ;;  %v690_v16 = vpack.c.bf16 %v490_v13, %v488_v12  ;;  %v692_v17 = vpack.c.bf16 %v495_v15, %v493_v14  ;;  %v492_v59 = vld [vmem:[%s1071_s3 + $0x80] sm:$0xff]  ;;  %v494_v18 = vld [vmem:[%s1071_s3 + $0x90] sm:$0xff]  ;;  %v497_v19 = vld [vmem:[%s1071_s3 + $0xa8] sm:$0xff] }
 0x15b   :  { %v342_v21 = vsel %vm228_vm14, nan, %v341_v20  ;;  %v238_v23 = vsel %vm228_vm14, nan, %v237_v22  ;;  %v499_v20 = vld [vmem:[%s1071_s3 + $0xb8] sm:$0xff] }
 0x15c   :  { %361 = vperm.xlu1 %728, %v342_v21   ;;  %349 = vperm.xlu0 %727, %v342_v21   ;;  %v696_v22 = vpack.c.bf16 %v499_v20, %v497_v19 }
 0x160   :  { %365 = vperm.xlu1 %728, %v238_v23   ;;  %354 = vperm.xlu0 %727, %v238_v23  }
 0x164   :  { %730 = vset.pattern.permute.xlu1 %v796_v24  ;;  %729 = vset.pattern.permute.xlu0 %v796_v24  ;;  %v498_v24 = vld [vmem:[%s1071_s3 + $0xb0] sm:$0xff] }
 0x165   :  { %377 = vperm.xlu1 %730, %v238_v23   ;;  %373 = vperm.xlu0 %729, %v342_v21  }
 0x169   :  { %731 = vset.pattern.permute.xlu1 %v797_v54  ;;  %732 = vset.pattern.permute.xlu0 %v797_v54  ;;  %v502_v54 = vld [vmem:[%s1071_s3 + $0xd0] sm:$0xff] }
 0x16a   :  { %385 = vperm.xlu1 %731, %v342_v21   ;;  %389 = vperm.xlu0 %732, %v238_v23   ;;  %v694_v21 = vpack.c.bf16 %v494_v18, %v492_v59  ;;  %v496_v23 = vld [vmem:[%s1071_s3 + $0xa0] sm:$0xff]  ;;  %v702_v30 = vpack.c.bf16 %v502_v54, %v500_v29 }
 0x16b   :  { %v698_v27 = vpack.c.bf16 %v498_v24, %v496_v23 }
 0x1db   :  { %v362_v37 = vpop.permute.xlu1 %361  ;;  %v350_v38 = vpop.permute.xlu0 %349 }
 0x1df   :  { %v366_v41 = vpop.permute.xlu1 %365  ;;  %v355_v42 = vpop.permute.xlu0 %354 }
 0x1e0   :  { %v368_v45 = vsel %vm359_vm0, %v362_v37, %v366_v41  ;;  %v357_v46 = vsel %vm346_vm1, %v350_v38, %v355_v42 }
 0x1e1   :  { %v369_v50 = vmul.f32 %v368_v45, %v357_v46 }
 0x1e4   :  { %v378_v47 = vpop.permute.xlu1 %377  ;;  %v374_v48 = vpop.permute.xlu0 %373 }
 0x1e5   :  { %v380_v49 = vsel %vm371_vm2, %v374_v48, %v378_v47 }
 0x1e6   :  { %v381_v56 = vmul.f32 %v380_v49, %v369_v50 }
 0x1e9   :  { %v386_v57 = vpop.permute.xlu1 %385  ;;  %v390_v58 = vpop.permute.xlu0 %389 }
 0x1ea   :  { %v392_v60 = vsel %vm383_vm3, %v386_v57, %v390_v58 }
 0x1eb   :  { %v393_v62 = vmul.f32 %v392_v60, %v381_v56 }
 0x1ed   :  { %604 = vmatmul.mubr.msk.f32.vlgmr.msra.gmra.mrb[0].mxu1 %vm398_vm4, %v393_v62 }
 0x1ee   :  { %679 = vmatpush1.bf16.msra.mxu1 %v678_v61  ;;  %572 = vmatprep.mubr.f32.mxu1 %v798_v31  ;;  %v505_v31 = vld [vmem:[%s1071_s3 + $0xe8] sm:$0xff] }
 0x1ef   :  { %681 = vmatprep.subr.bf16.mxu1 %v680_v63  ;;  %v704_v33 = vpack.c.bf16 %v507_v32, %v505_v31 }
 0x1f2   :  { %683 = vmatpush1.bf16.msra.mxu1 %v682_v4 }
 0x1f3   :  { %685 = vmatprep.subr.bf16.mxu1 %v684_v5 }
 0x1f6   :  { %687 = vmatpush1.bf16.msra.mxu1 %v686_v10 }
 0x1f7   :  { %689 = vmatprep.subr.bf16.mxu1 %v688_v11 }
 0x1fa   :  { %691 = vmatpush1.bf16.msra.mxu1 %v690_v16 }
 0x1fb   :  { %693 = vmatprep.subr.bf16.mxu1 %v692_v17 }
 0x1fe   :  { %695 = vmatpush1.bf16.msra.mxu1 %v694_v21 }
 0x1ff   :  { %697 = vmatprep.subr.bf16.mxu1 %v696_v22 }
 0x202   :  { %699 = vmatpush1.bf16.msra.mxu1 %v698_v27 }
 0x203   :  { %701 = vmatprep.subr.bf16.mxu1 %v700_v28 }
 0x206   :  { %703 = vmatpush1.bf16.msra.mxu1 %v702_v30 }
 0x207   :  { %705 = vmatprep.subr.bf16.mxu1 %v704_v33 }
 0x20a   :  { %707 = vmatpush1.bf16.msra.mxu1 %v706_v36 }
 0x2c0   :  { %v468_v37 = vpop.f32.mrb[0].mxu1 }
 0x2c1   :  { %v473_v38 = vmul.f32 %v468_v37, %v468_v37  ;;  %v470_v39 = vpop.f32.mrb[1].mxu1 }
 0x2c2   :  { %v474_v40 = vmul.f32 %v470_v39, %v470_v39 }
 0x2c4   :  { %v475_v41 = vadd.f32 %v474_v40, %v473_v38 }
 0x2c6   :  { %573 = vmatmul.mubr.f32.vlgmr.msra.gmra.mrb[2].mxu1 %v475_v41 }
 0x399   :  { %v574_v42 = vpop.f32.mrb[2].mxu1 }
 0x39a   :  { %579 = vst [vmem:[#allocation5] sm:$0xff] %v574_v42  ;;  %v576_v43 = vpop.f32.mrb[3].mxu1 }
 0x39b   :  { %580 = vst [vmem:[#allocation5 + $0x8] sm:$0xff] %v576_v43 }
 0x39c   :  { %770 = shalt.err (!%p767_p12)
}
 0x39d   :  { %s771_s24 = scalar_lea.hbm %s1072_s4, 256 }
 0x39e   :  { %p772_p13 = scmp.ne.s32.totalorder %s1072_s4, %s771_s24  ;;  %p775_p0 = scmp.lt.u32.totalorder %s771_s24, %s1072_s4 }
 0x3a0   :  { %p777_p1 = pnand %p775_p0, %p772_p13 }
 0x3a2   :  { %780 = shalt.err (!%p777_p1)
}
 0x3a3   :  { %590 = dma.vmem_to_hbm [thread:$0]  %s588_s21, 256, %s1072_s4, [#allocation4]  }
 0x3a4   :  { %783 = dma.done.wait [#allocation4], 256  }
 0x3a5   :  { %784 = vsyncadd [#allocation4], 4294967040 }
 0x3a6   :  { %594 = vsyncpa [#allocation3], 1 }
 0x3a7   :  { %595 = vsyncpa [#allocation4], 1 }

</bundles_post_ra>
